<compile_context>
chip_gen: v7x
topology: tpu7x:2x2x1
jax: 0.10.0
libtpu: 0.0.40
codegen_flags: <defaults>
</compile_context>

<pallas_src>
import functools
import numpy as np
import jax
import jax.numpy as jnp
from jax.experimental import pallas as pl
from jax.experimental.pallas import tpu as pltpu

_F32 = jnp.float32
_BF16 = jnp.bfloat16
_BN_EPS = 1e-5


def _round_up(v, m):
    return -(-v // m) * m


def _compute_vmem_limit():
    """Per-generation VMEM request: <= 3/4 of physical capacity, capped at 100 MiB."""
    cap = None
    try:
        info = pltpu.get_tpu_info()
        cap = getattr(info, "vmem_capacity_bytes", None)
    except Exception:
        cap = None
    if not cap:
        cap = 64 * 1024 * 1024   # conservative default (v7x per-TensorCore)
    return int(min(cap * 3 // 4, 100 * 1024 * 1024))


_VMEM_LIMIT = _compute_vmem_limit()


def _cparams(semantics):
    return pltpu.CompilerParams(dimension_semantics=semantics,
                                vmem_limit_bytes=_VMEM_LIMIT)


# --------------------------------------------------------------------------
# Tiled MXU matmul kernel (bf16 operands, f32 accumulation)
# --------------------------------------------------------------------------
def _mm_kernel(x_ref, w_ref, o_ref, acc_ref):
    @pl.when(pl.program_id(2) == 0)
    def _init():
        acc_ref[...] = jnp.zeros_like(acc_ref)

    acc_ref[...] += jnp.dot(x_ref[...], w_ref[...],
                            preferred_element_type=jnp.float32)

    @pl.when(pl.program_id(2) == pl.num_programs(2) - 1)
    def _done():
        o_ref[...] = acc_ref[...].astype(o_ref.dtype)


def _pick_tile(size, candidates, align):
    padded = _round_up(size, align)
    for t in candidates:
        if t <= padded and padded % t == 0:
            return t, padded
    t = candidates[0]
    return t, _round_up(size, t)


@jax.jit
def pallas_matmul(x, w):
    """(M, K) @ (K, N) -> (M, N) f32, tiled over an (M, N, K) grid."""
    M, K = x.shape
    K2, N = w.shape
    assert K == K2
    x = x.astype(_BF16)
    w = w.astype(_BF16)

    if M > 256:
        tm = 256
        Mp = _round_up(M, tm)
    else:
        tm = _round_up(M, 8)
        Mp = tm
    tk, Kp = _pick_tile(K, (512, 384, 256, 128), 128)
    tn, Np = _pick_tile(N, (256, 128), 128)

    if (Mp, Kp) != (M, K):
        x = jnp.pad(x, ((0, Mp - M), (0, Kp - K)))
    if (Kp, Np) != (K, N):
        w = jnp.pad(w, ((0, Kp - K), (0, Np - N)))

    out = pl.pallas_call(
        _mm_kernel,
        out_shape=jax.ShapeDtypeStruct((Mp, Np), _F32),
        grid=(Mp // tm, Np // tn, Kp // tk),
        in_specs=[pl.BlockSpec((tm, tk), lambda i, j, k: (i, k)),
                  pl.BlockSpec((tk, tn), lambda i, j, k: (k, j))],
        out_specs=pl.BlockSpec((tm, tn), lambda i, j, k: (i, j)),
        scratch_shapes=[pltpu.VMEM((tm, tn), jnp.float32)],
        compiler_params=_cparams(("parallel", "parallel", "arbitrary")),
    )(x, w)
    if (Mp, Np) != (M, N):
        out = out[:M, :N]
    return out


# --------------------------------------------------------------------------
# Depthwise 3x3 kernel (grid over batch, optional fused input-ReLU)
# --------------------------------------------------------------------------
@functools.lru_cache(maxsize=None)
def _make_dw_kernel(dil, relu_in):
    def kernel(x_ref, w_ref, o_ref):
        _, ho, wo, c = o_ref.shape
        x = x_ref[...]
        if relu_in:
            x = jnp.maximum(x, 0.0)     # relu(0)=0 so padded border stays correct
        w = w_ref[...]                  # (3, 3, C)
        acc = jnp.zeros(o_ref.shape, jnp.float32)
        for kh in range(3):             # 9 static taps
            for kw in range(3):
                xs = x[:, kh * dil:kh * dil + ho, kw * dil:kw * dil + wo, :]
                acc = acc + xs * w[kh, kw][None, None, None, :]
        o_ref[...] = acc
    return kernel


@functools.partial(jax.jit, static_argnames=("dil", "relu_in"))
def pallas_dwconv3x3(xp, w, *, dil, relu_in=False):
    """Depthwise 3x3, stride 1, dilation `dil` on an already-padded NHWC input."""
    N, Hp, Wp, C = xp.shape
    Ho, Wo = Hp - 2 * dil, Wp - 2 * dil
    return pl.pallas_call(
        _make_dw_kernel(dil, relu_in),
        out_shape=jax.ShapeDtypeStruct((N, Ho, Wo, C), _F32),
        grid=(N,),
        in_specs=[pl.BlockSpec((1, Hp, Wp, C), lambda n: (n, 0, 0, 0)),
                  pl.BlockSpec((3, 3, C), lambda n: (0, 0, 0))],
        out_specs=pl.BlockSpec((1, Ho, Wo, C), lambda n: (n, 0, 0, 0)),
        compiler_params=_cparams(("parallel",)),
    )(xp, w)


# --------------------------------------------------------------------------
# BatchNorm2d (training-mode batch stats): tiled stats pass + fused normalize pass
# --------------------------------------------------------------------------
def _row_tiles(M):
    tm = 512 if M > 512 else _round_up(M, 8)
    return tm, _round_up(M, tm)


def _bn_stats_kernel(x_ref, sum_ref, sq_ref):
    x = x_ref[...]
    s = jnp.sum(x, axis=0, keepdims=True)
    q = jnp.sum(x * x, axis=0, keepdims=True)

    @pl.when(pl.program_id(0) == 0)
    def _init():
        sum_ref[...] = s
        sq_ref[...] = q

    @pl.when(pl.program_id(0) != 0)
    def _acc():
        sum_ref[...] = sum_ref[...] + s
        sq_ref[...] = sq_ref[...] + q


@functools.lru_cache(maxsize=None)
def _make_bn_apply_kernel(relu, has_res):
    if has_res:
        def kernel(x_ref, sc_ref, sh_ref, r_ref, o_ref):
            y = x_ref[...] * sc_ref[...] + sh_ref[...]
            if relu:
                y = jnp.maximum(y, 0.0)
            o_ref[...] = y + r_ref[...]
    else:
        def kernel(x_ref, sc_ref, sh_ref, o_ref):
            y = x_ref[...] * sc_ref[...] + sh_ref[...]
            if relu:
                y = jnp.maximum(y, 0.0)
            o_ref[...] = y
    return kernel


@functools.partial(jax.jit, static_argnames=("relu",))
def pallas_batchnorm2d(x, *, relu=False, residual=None):
    """Training-mode BN over (N,H,W) per channel; gamma=1, beta=0 (__init_weight).
    Optionally fuses a trailing ReLU and/or residual add (out = maybe_relu(bn(x)) + residual)."""
    N, H, W, C = x.shape
    M = N * H * W
    x2 = x.reshape(M, C)
    tm, Mp = _row_tiles(M)
    if Mp != M:
        x2 = jnp.pad(x2, ((0, Mp - M), (0, 0)))

    ssum, ssq = pl.pallas_call(
        _bn_stats_kernel,
        out_shape=(jax.ShapeDtypeStruct((1, C), _F32),
                   jax.ShapeDtypeStruct((1, C), _F32)),
        grid=(Mp // tm,),
        in_specs=[pl.BlockSpec((tm, C), lambda i: (i, 0))],
        out_specs=(pl.BlockSpec((1, C), lambda i: (0, 0)),
                   pl.BlockSpec((1, C), lambda i: (0, 0))),
        compiler_params=_cparams(("arbitrary",)),
    )(x2)

    mean = ssum / M                                  # zero-padded rows contribute 0
    var = jnp.maximum(ssq / M - mean * mean, 0.0)    # biased var, like torch training BN
    scale = jax.lax.rsqrt(var + _BN_EPS)             # gamma = 1
    shift = -mean * scale                            # beta = 0

    has_res = residual is not None
    if has_res:
        r2 = residual.reshape(M, C)
        if Mp != M:
            r2 = jnp.pad(r2, ((0, Mp - M), (0, 0)))
        args = (x2, scale, shift, r2)
        in_specs = [pl.BlockSpec((tm, C), lambda i: (i, 0)),
                    pl.BlockSpec((1, C), lambda i: (0, 0)),
                    pl.BlockSpec((1, C), lambda i: (0, 0)),
                    pl.BlockSpec((tm, C), lambda i: (i, 0))]
    else:
        args = (x2, scale, shift)
        in_specs = [pl.BlockSpec((tm, C), lambda i: (i, 0)),
                    pl.BlockSpec((1, C), lambda i: (0, 0)),
                    pl.BlockSpec((1, C), lambda i: (0, 0))]

    y = pl.pallas_call(
        _make_bn_apply_kernel(relu, has_res),
        out_shape=jax.ShapeDtypeStruct((Mp, C), _F32),
        grid=(Mp // tm,),
        in_specs=in_specs,
        out_specs=pl.BlockSpec((tm, C), lambda i: (i, 0)),
        compiler_params=_cparams(("parallel",)),
    )(*args)
    if Mp != M:
        y = y[:M]
    return y.reshape(N, H, W, C)


# --------------------------------------------------------------------------
# Tiled elementwise fallbacks (not hit in the os=16 config: relu/add are fused)
# --------------------------------------------------------------------------
def _relu_kernel(x_ref, o_ref):
    o_ref[...] = jnp.maximum(x_ref[...], 0.0)


def _add_kernel(a_ref, b_ref, o_ref):
    o_ref[...] = a_ref[...] + b_ref[...]


@jax.jit
def pallas_relu(x):
    N, H, W, C = x.shape
    M = N * H * W
    tm, Mp = _row_tiles(M)
    x2 = x.reshape(M, C)
    if Mp != M:
        x2 = jnp.pad(x2, ((0, Mp - M), (0, 0)))
    y = pl.pallas_call(
        _relu_kernel,
        out_shape=jax.ShapeDtypeStruct((Mp, C), _F32),
        grid=(Mp // tm,),
        in_specs=[pl.BlockSpec((tm, C), lambda i: (i, 0))],
        out_specs=pl.BlockSpec((tm, C), lambda i: (i, 0)),
        compiler_params=_cparams(("parallel",)),
    )(x2)
    if Mp != M:
        y = y[:M]
    return y.reshape(N, H, W, C)


@jax.jit
def pallas_add(a, b):
    N, H, W, C = a.shape
    M = N * H * W
    tm, Mp = _row_tiles(M)
    a2, b2 = a.reshape(M, C), b.reshape(M, C)
    if Mp != M:
        a2 = jnp.pad(a2, ((0, Mp - M), (0, 0)))
        b2 = jnp.pad(b2, ((0, Mp - M), (0, 0)))
    y = pl.pallas_call(
        _add_kernel,
        out_shape=jax.ShapeDtypeStruct((Mp, C), _F32),
        grid=(Mp // tm,),
        in_specs=[pl.BlockSpec((tm, C), lambda i: (i, 0)),
                  pl.BlockSpec((tm, C), lambda i: (i, 0))],
        out_specs=pl.BlockSpec((tm, C), lambda i: (i, 0)),
        compiler_params=_cparams(("parallel",)),
    )(a2, b2)
    if Mp != M:
        y = y[:M]
    return y.reshape(N, H, W, C)


# --------------------------------------------------------------------------
# Composite ops (glue in JAX, compute in the kernels above)
# --------------------------------------------------------------------------
def conv2d_3x3(x, w_hwio, *, stride, pad):
    """Regular 3x3 conv (conv1 / conv2): im2col in JAX + tiled Pallas matmul.
    # TODO(synk): replace im2col materialization with an in-kernel tap-accumulate matmul."""
    N, H, W, Cin = x.shape
    kh, kw, _, Cout = w_hwio.shape
    xp = jnp.pad(x, ((0, 0), (pad, pad), (pad, pad), (0, 0)))
    Ho = (H + 2 * pad - kh) // stride + 1
    Wo = (W + 2 * pad - kw) // stride + 1
    cols = []
    for i in range(kh):
        for j in range(kw):
            cols.append(xp[:, i:i + stride * Ho:stride, j:j + stride * Wo:stride, :])
    patches = jnp.concatenate(cols, axis=-1).reshape(N * Ho * Wo, kh * kw * Cin)
    out = pallas_matmul(patches, w_hwio.reshape(kh * kw * Cin, Cout))
    return out.reshape(N, Ho, Wo, Cout)


def sep_conv_same(x, p, *, stride, dil, relu_in=False):
    """SeparableConv2d_same: fixed_padding -> depthwise 3x3 -> pointwise 1x1.
    The preceding ReLU of the Block 'rep' sequence is fused via relu_in."""
    N, H, W, Cin = x.shape
    # fixed_padding: k_eff = 3 + 2*(dil-1) => pad dil on each side
    xp = jnp.pad(x, ((0, 0), (dil, dil), (dil, dil), (0, 0)))
    y = pallas_dwconv3x3(xp, p['dw'], dil=dil, relu_in=relu_in)
    if stride > 1:
        # TODO(synk): fold the stride into the depthwise tap slices to avoid 4x waste
        # (only 3 stride-2 sep convs in this network, at the smallest resolutions).
        y = y[:, ::stride, ::stride, :]
    Ho, Wo = y.shape[1], y.shape[2]
    Cout = p['pw'].shape[1]
    y = pallas_matmul(y.reshape(N * Ho * Wo, Cin), p['pw'])
    # TODO(synk): fuse depthwise+pointwise into one kernel (dw result staying in VMEM).
    return y.reshape(N, Ho, Wo, Cout)


def block_forward(x, blk):
    inp = x
    ops = blk['ops']
    n = len(ops)
    y = x
    i = 0
    while i < n:
        kind, spec = ops[i]
        if kind == 'relu':
            if i + 1 < n and ops[i + 1][0] == 'sep':       # fuse relu into next sep conv
                s2 = ops[i + 1][1]
                y = sep_conv_same(y, s2['p'], stride=s2['stride'], dil=s2['dil'],
                                  relu_in=True)
                i += 2
                continue
            y = pallas_relu(y)
            i += 1
        elif kind == 'sep':
            y = sep_conv_same(y, spec['p'], stride=spec['stride'], dil=spec['dil'])
            i += 1
        else:  # 'bn'
            if i == n - 1 and blk['skip'] is None:
                # fuse the residual add (x += inp) into the final BN of the block
                return pallas_batchnorm2d(y, residual=inp)
            y = pallas_batchnorm2d(y)
            i += 1

    if blk['skip'] is not None:
        s = inp
        st = blk['skip']['stride']
        if st > 1:
            s = s[:, ::st, ::st, :]
        Ns, Hs, Ws, Cin = s.shape
        Cout = blk['skip']['w'].shape[1]
        s = pallas_matmul(s.reshape(Ns * Hs * Ws, Cin),
                          blk['skip']['w']).reshape(Ns, Hs, Ws, Cout)
        # skipbn fused with the residual add: result = main + bn(skip)
        return pallas_batchnorm2d(s, residual=y)
    return pallas_add(y, inp)   # not hit in os=16 config (kept for generality)


# --------------------------------------------------------------------------
# Deterministic parameter initialization (mirrors __init__ / __init_weight)
# The 728-wide middle channels are zero-padded to 768 (multiple of 128) for
# lane-dense layout; padded lanes carry exact zeros end-to-end, so the real
# channels are numerically identical to the unpadded model.
# --------------------------------------------------------------------------
_C_PAD = {728: 768}


def _padc(c):
    return _C_PAD.get(c, c)


class KeyGen:
    def __init__(self, key):
        self._key, self._i = key, 0

    def __call__(self):
        k = jax.random.fold_in(self._key, self._i)
        self._i += 1
        return k


def kaiming(kg, shape, fan_in):
    return (jax.random.normal(kg(), shape, _F32) * np.sqrt(2.0 / fan_in)).astype(_F32)


def sep_params(kg, cin, cout):
    pcin, pcout = _padc(cin), _padc(cout)
    dw = jnp.zeros((3, 3, pcin), _F32).at[:, :, :cin].set(
        kaiming(kg, (3, 3, cin), 9))                 # depthwise: fan_in = 1*3*3
    pw = jnp.zeros((pcin, pcout), _F32).at[:cin, :cout].set(
        kaiming(kg, (cin, cout), cin))               # pointwise 1x1: fan_in = cin
    return {'dw': dw, 'pw': pw}


def skip_params(kg, cin, cout):
    pcin, pcout = _padc(cin), _padc(cout)
    return jnp.zeros((pcin, pcout), _F32).at[:cin, :cout].set(
        kaiming(kg, (cin, cout), cin))


def build_block(kg, inplanes, planes, reps, stride=1, dilation=1,
                start_with_relu=True, grow_first=True, is_last=False):
    ops = []
    filters = inplanes
    if grow_first:
        ops.append(('relu', None))
        ops.append(('sep', {'p': sep_params(kg, inplanes, planes), 'stride': 1, 'dil': dilation}))
        ops.append(('bn', None))
        filters = planes
    for _ in range(reps - 1):
        ops.append(('relu', None))
        ops.append(('sep', {'p': sep_params(kg, filters, filters), 'stride': 1, 'dil': dilation}))
        ops.append(('bn', None))
    if not grow_first:
        ops.append(('relu', None))
        ops.append(('sep', {'p': sep_params(kg, inplanes, planes), 'stride': 1, 'dil': dilation}))
        ops.append(('bn', None))
    if not start_with_relu:
        ops = ops[1:]
    if stride != 1:
        ops.append(('sep', {'p': sep_params(kg, planes, planes), 'stride': 2, 'dil': 1}))
    if stride == 1 and is_last:
        ops.append(('sep', {'p': sep_params(kg, planes, planes), 'stride': 1, 'dil': 1}))
    skip = None
    if planes != inplanes or stride != 1:
        skip = {'w': skip_params(kg, inplanes, planes), 'stride': stride}
    return {'ops': ops, 'skip': skip}


def init_xception_params(key, inplanes=3, os=16):
    assert os == 16
    entry_block3_stride, middle_block_rate, exit_block_rates = 2, 1, (1, 2)
    kg = KeyGen(key)
    p = {}
    p['conv1'] = kaiming(kg, (3, 3, inplanes, 32), inplanes * 9)
    p['conv2'] = kaiming(kg, (3, 3, 32, 64), 32 * 9)
    p['block1'] = build_block(kg, 64, 128, reps=2, stride=2, start_with_relu=False)
    p['block2'] = build_block(kg, 128, 256, reps=2, stride=2, start_with_relu=True, grow_first=True)
    p['block3'] = build_block(kg, 256, 728, reps=2, stride=entry_block3_stride,
                              start_with_relu=True, grow_first=True, is_last=True)
    for i in range(4, 20):
        p[f'block{i}'] = build_block(kg, 728, 728, reps=3, stride=1, dilation=middle_block_rate,
                                     start_with_relu=True, grow_first=True)
    p['block20'] = build_block(kg, 728, 1024, reps=2, stride=1, dilation=exit_block_rates[0],
                               start_with_relu=True, grow_first=False, is_last=True)
    p['conv3'] = sep_params(kg, 1024, 1536)
    p['conv4'] = sep_params(kg, 1536, 1536)
    p['conv5'] = sep_params(kg, 1536, 2048)
    p['exit_rate'] = exit_block_rates[1]
    return p


# --------------------------------------------------------------------------
# Full forward (PyTorch Xception.forward equivalent)
# --------------------------------------------------------------------------
def xception_forward(x_nchw, params):
    x = jnp.transpose(x_nchw, (0, 2, 3, 1)).astype(_F32)   # NCHW -> NHWC
    x = conv2d_3x3(x, params['conv1'], stride=2, pad=1)
    x = pallas_batchnorm2d(x, relu=True)                   # bn1 + relu
    x = conv2d_3x3(x, params['conv2'], stride=1, pad=1)
    x = pallas_batchnorm2d(x, relu=True)                   # bn2 + relu
    x = block_forward(x, params['block1'])
    low_level_feat = x
    for i in range(2, 21):
        x = block_forward(x, params[f'block{i}'])
    r = params['exit_rate']
    x = sep_conv_same(x, params['conv3'], stride=1, dil=r)
    x = pallas_batchnorm2d(x, relu=True)                   # bn3 + relu
    x = sep_conv_same(x, params['conv4'], stride=1, dil=r)
    x = pallas_batchnorm2d(x, relu=True)                   # bn4 + relu
    x = sep_conv_same(x, params['conv5'], stride=1, dil=r)
    x = pallas_batchnorm2d(x, relu=True)                   # bn5 + relu
    return (jnp.transpose(x, (0, 3, 1, 2)),                # back to NCHW
            jnp.transpose(low_level_feat, (0, 3, 1, 2)))


if __name__ == "__main__":
    key = jax.random.PRNGKey(0)
    pkey, xkey = jax.random.split(key)
    params = init_xception_params(pkey, inplanes=3, os=16)
    x = jax.random.normal(xkey, (2, 3, 16, 16), _F32)       # NCHW, like the PyTorch module
    out, low = xception_forward(x, params)
    jax.block_until_ready((out, low))
    assert out.shape == (2, 2048, 1, 1), out.shape
    assert low.shape == (2, 128, 4, 4), low.shape
    assert jnp.all(jnp.isfinite(out)) and jnp.all(jnp.isfinite(low))
    print("KERNEL_OK")
</pallas_src>

<mosaic_0001>
module attributes {stable_mosaic.version = 11 : i64} {
  func.func @_mm_kernel(%arg0: i32, %arg1: i32, %arg2: i32, %arg3: memref<128x128xbf16, #tpu.memory_space<vmem>>, %arg4: memref<128x128xbf16, #tpu.memory_space<vmem>>, %arg5: memref<128x128xf32, #tpu.memory_space<vmem>>, %arg6: memref<128x128xf32, #tpu.memory_space<vmem>>) attributes {dimension_semantics = [#tpu.dimension_semantics<parallel>, #tpu.dimension_semantics<parallel>, #tpu.dimension_semantics<arbitrary>], iteration_bounds = array<i64: 1, 1, 1>, scalar_prefetch = 0 : i64, scratch_operands = 1 : i64, tpu.core_type = #tpu.core_type<tc>, window_params = [{transform_indices = @transform_0, window_bounds = array<i64: 128, 128>}, {transform_indices = @transform_1, window_bounds = array<i64: 128, 128>}, {transform_indices = @transform_2, window_bounds = array<i64: 128, 128>}]} {
    %c0_i32 = arith.constant 0 : i32
    %0 = arith.cmpi eq, %arg2, %c0_i32 : i32
    %1 = arith.extui %0 : i1 to i32
    %c0_i32_0 = arith.constant 0 : i32
    %2 = arith.cmpi ne, %1, %c0_i32_0 : i32
    scf.if %2 {
      %cst_10 = arith.constant 0.000000e+00 : f32
      %12 = vector.broadcast %cst_10 : f32 to vector<128x128xf32>
      %c0_11 = arith.constant 0 : index
      %c0_12 = arith.constant 0 : index
      %13 = vector.load %arg6[%c0_11, %c0_12] : memref<128x128xf32, #tpu.memory_space<vmem>>, vector<128x128xf32>
      tpu.vector_store %arg6[%c0_11, %c0_12], %12 {strides = array<i32>} : memref<128x128xf32, #tpu.memory_space<vmem>>, vector<128x128xf32>,
    } else {
    }
    %c0 = arith.constant 0 : index
    %c0_1 = arith.constant 0 : index
    %3 = vector.load %arg6[%c0, %c0_1] : memref<128x128xf32, #tpu.memory_space<vmem>>, vector<128x128xf32>
    %c0_2 = arith.constant 0 : index
    %c0_3 = arith.constant 0 : index
    %4 = vector.load %arg3[%c0_2, %c0_3] : memref<128x128xbf16, #tpu.memory_space<vmem>>, vector<128x128xbf16>
    %c0_4 = arith.constant 0 : index
    %c0_5 = arith.constant 0 : index
    %5 = vector.load %arg4[%c0_4, %c0_5] : memref<128x128xbf16, #tpu.memory_space<vmem>>, vector<128x128xbf16>
    %cst = arith.constant dense<0.000000e+00> : vector<128x128xf32>
    %6 = tpu.matmul %4, %5, %cst {dimension_numbers = #tpu.dot_dimension_numbers<[1], [0], [0], [1], [0, 0, 1, 1], [], []>} : vector<128x128xbf16>, vector<128x128xbf16>, vector<128x128xf32> -> vector<128x128xf32>
    %7 = arith.addf %3, %6 : vector<128x128xf32>
    %c0_6 = arith.constant 0 : index
    %c0_7 = arith.constant 0 : index
    %8 = vector.load %arg6[%c0_6, %c0_7] : memref<128x128xf32, #tpu.memory_space<vmem>>, vector<128x128xf32>
    tpu.vector_store %arg6[%c0_6, %c0_7], %7 {strides = array<i32>} : memref<128x128xf32, #tpu.memory_space<vmem>>, vector<128x128xf32>,
    %c0_i32_8 = arith.constant 0 : i32
    %9 = arith.cmpi eq, %arg2, %c0_i32_8 : i32
    %10 = arith.extui %9 : i1 to i32
    %c0_i32_9 = arith.constant 0 : i32
    %11 = arith.cmpi ne, %10, %c0_i32_9 : i32
    scf.if %11 {
      %c0_10 = arith.constant 0 : index
      %c0_11 = arith.constant 0 : index
      %12 = vector.load %arg6[%c0_10, %c0_11] : memref<128x128xf32, #tpu.memory_space<vmem>>, vector<128x128xf32>
      %c0_12 = arith.constant 0 : index
      %c0_13 = arith.constant 0 : index
      %13 = vector.load %arg5[%c0_12, %c0_13] : memref<128x128xf32, #tpu.memory_space<vmem>>, vector<128x128xf32>
      tpu.vector_store %arg5[%c0_12, %c0_13], %12 {strides = array<i32>} : memref<128x128xf32, #tpu.memory_space<vmem>>, vector<128x128xf32>,
    } else {
    }
    return
  }
  func.func @transform_0(%arg0: i32, %arg1: i32, %arg2: i32) -> (i32, i32) {
    %c0_i32 = arith.constant 0 : i32
    return %arg0, %arg2 : i32, i32
  }
  func.func @transform_1(%arg0: i32, %arg1: i32, %arg2: i32) -> (i32, i32) {
    %c0_i32 = arith.constant 0 : i32
    return %arg2, %arg1 : i32, i32
  }
  func.func @transform_2(%arg0: i32, %arg1: i32, %arg2: i32) -> (i32, i32) {
    %c0_i32 = arith.constant 0 : i32
    return %arg0, %arg1 : i32, i32
  }
}

</mosaic_0001>

<bundles_post_ra>
// kernel: pallas_matmul.1
= control target key start
LH: loop header
LB: loop body
LE: loop exit
PB: predicated region body
PF: predicated region fallthrough
CT: control target
= control target key end

     0   :  { %s551_s1 = inlined_call_operand.vmem [shape: bf16[128,128], index: 1, kind: input, shape index: {}]   ;;  %s552_s0 = inlined_call_operand.vmem [shape: bf16[128,128], index: 0, kind: input, shape index: {}]   ;;  %s553_s2 = inlined_call_operand.vmem [shape: f32[128,128], index: 2, kind: output, shape index: {}]  }
   0x1   :  { %v424_v0 = vld [vmem:[%s551_s1] sm:$0xff]   ;;  %v425_v1 = vld [vmem:[%s551_s1 + $0x8] sm:$0xff]   ;;  %v426_v2 = vld [vmem:[%s551_s1 + $0x10] sm:$0xff]  }
   0x2   :  { %376 = vmatprep.subr.bf16.mxu0 %v424_v0  ;;  %408 = vmatprep.subr.bf16.mxu1 %v424_v0  ;;  %v427_v3 = vld [vmem:[%s551_s1 + $0x18] sm:$0xff]   ;;  %v432_v4 = vld [vmem:[%s552_s0] sm:$0xff]   ;;  %v429_v7 = vld [vmem:[%s551_s1 + $0x28] sm:$0xff]  }
   0x3   :  { %377 = vmatpush3.bf16.msra.mxu0 %v424_v0  ;;  %416 = vmatpush3.bf16.msra.mxu1 %v424_v0  ;;  %v433_v5 = vld [vmem:[%s552_s0 + $0x20] sm:$0xff]   ;;  %v430_v8 = vld [vmem:[%s551_s1 + $0x30] sm:$0xff]   ;;  %v431_v9 = vld [vmem:[%s551_s1 + $0x38] sm:$0xff]  }
   0x4   :  { %378 = vmatprep.subr.bf16.mxu0 %v425_v1  ;;  %409 = vmatprep.subr.bf16.mxu1 %v425_v1  ;;  %v428_v6 = vld [vmem:[%s551_s1 + $0x20] sm:$0xff]   ;;  %v434_v10 = vld [vmem:[%s552_s0 + $0x8] sm:$0xff]   ;;  %v436_v12 = vld [vmem:[%s552_s0 + $0x10] sm:$0xff]  }
   0x5   :  { %392 = vmatprep.mubr.bf16.mxu0 %v432_v4  ;;  %400 = vmatprep.mubr.bf16.mxu1 %v433_v5  ;;  %v435_v11 = vld [vmem:[%s552_s0 + $0x28] sm:$0xff]   ;;  %v437_v13 = vld [vmem:[%s552_s0 + $0x30] sm:$0xff]   ;;  %v438_v14 = vld [vmem:[%s552_s0 + $0x18] sm:$0xff]  }
   0x6   :  { %v439_v15 = vld [vmem:[%s552_s0 + $0x38] sm:$0xff]  }
   0x7   :  { %379 = vmatpush3.bf16.msra.mxu0 %v425_v1  ;;  %417 = vmatpush3.bf16.msra.mxu1 %v425_v1 }
   0x8   :  { %380 = vmatprep.subr.bf16.mxu0 %v426_v2  ;;  %410 = vmatprep.subr.bf16.mxu1 %v426_v2 }
   0xb   :  { %381 = vmatpush3.bf16.msra.mxu0 %v426_v2  ;;  %418 = vmatpush3.bf16.msra.mxu1 %v426_v2 }
   0xc   :  { %382 = vmatprep.subr.bf16.mxu0 %v427_v3  ;;  %411 = vmatprep.subr.bf16.mxu1 %v427_v3 }
   0xf   :  { %383 = vmatpush3.bf16.msra.mxu0 %v427_v3  ;;  %419 = vmatpush3.bf16.msra.mxu1 %v427_v3 }
  0x10   :  { %384 = vmatprep.subr.bf16.mxu0 %v428_v6  ;;  %412 = vmatprep.subr.bf16.mxu1 %v428_v6 }
  0x13   :  { %385 = vmatpush3.bf16.msra.mxu0 %v428_v6  ;;  %420 = vmatpush3.bf16.msra.mxu1 %v428_v6 }
  0x14   :  { %386 = vmatprep.subr.bf16.mxu0 %v429_v7  ;;  %413 = vmatprep.subr.bf16.mxu1 %v429_v7 }
  0x17   :  { %387 = vmatpush3.bf16.msra.mxu0 %v429_v7  ;;  %421 = vmatpush3.bf16.msra.mxu1 %v429_v7 }
  0x18   :  { %388 = vmatprep.subr.bf16.mxu0 %v430_v8  ;;  %414 = vmatprep.subr.bf16.mxu1 %v430_v8 }
  0x1b   :  { %389 = vmatpush3.bf16.msra.mxu0 %v430_v8  ;;  %422 = vmatpush3.bf16.msra.mxu1 %v430_v8 }
  0x1c   :  { %390 = vmatprep.subr.bf16.mxu0 %v431_v9  ;;  %415 = vmatprep.subr.bf16.mxu1 %v431_v9 }
  0x1f   :  { %391 = vmatpush3.bf16.msra.mxu0 %v431_v9  ;;  %423 = vmatpush3.bf16.msra.mxu1 %v431_v9 }
  0x22   :  { %393 = vmatmul.mubr.bf16.vlgmr.msra.gmra.mrb[0].mxu0 %v434_v10  ;;  %401 = vmatmul.mubr.bf16.vlgmr.msra.gmra.mrb[0].mxu1 %v435_v11 }
  0x23   :  { %396 = vmatprep.mubr.bf16.mxu0 %v436_v12  ;;  %404 = vmatprep.mubr.bf16.mxu1 %v437_v13 }
  0x2a   :  { %397 = vmatmul.mubr.bf16.gmra.mrb[4].mxu0 %v438_v14  ;;  %405 = vmatmul.mubr.bf16.gmra.mrb[4].mxu1 %v439_v15 }
  0xf5   :  { %v394_v16 = vpop.f32.mrb[0].mxu0  ;;  %v402_v17 = vpop.f32.mrb[0].mxu1 }
  0xf6   :  { %326 = vst [vmem:[%s553_s2 + $0x10] sm:$0xff] %v394_v16  ;;  %334 = vst [vmem:[%s553_s2 + $0x50] sm:$0xff] %v402_v17  ;;  %v210_v18 = vpop.f32.mrb[1].mxu0  ;;  %v242_v19 = vpop.f32.mrb[1].mxu1 }
  0xf7   :  { %324 = vst [vmem:[%s553_s2] sm:$0xff] %v210_v18  ;;  %332 = vst [vmem:[%s553_s2 + $0x40] sm:$0xff] %v242_v19  ;;  %v395_v20 = vpop.f32.mrb[2].mxu0  ;;  %v403_v21 = vpop.f32.mrb[2].mxu1 }
  0xf8   :  { %327 = vst [vmem:[%s553_s2 + $0x18] sm:$0xff] %v395_v20  ;;  %335 = vst [vmem:[%s553_s2 + $0x58] sm:$0xff] %v403_v21  ;;  %v213_v22 = vpop.f32.mrb[3].mxu0  ;;  %v245_v23 = vpop.f32.mrb[3].mxu1 }
  0xf9   :  { %325 = vst [vmem:[%s553_s2 + $0x8] sm:$0xff] %v213_v22  ;;  %333 = vst [vmem:[%s553_s2 + $0x48] sm:$0xff] %v245_v23 }
  0xfd   :  { %v398_v24 = vpop.f32.mrb[4].mxu0  ;;  %v406_v25 = vpop.f32.mrb[4].mxu1 }
  0xfe   :  { %330 = vst [vmem:[%s553_s2 + $0x30] sm:$0xff] %v398_v24  ;;  %338 = vst [vmem:[%s553_s2 + $0x70] sm:$0xff] %v406_v25  ;;  %v226_v26 = vpop.f32.mrb[5].mxu0  ;;  %v258_v27 = vpop.f32.mrb[5].mxu1 }
  0xff   :  { %328 = vst [vmem:[%s553_s2 + $0x20] sm:$0xff] %v226_v26  ;;  %336 = vst [vmem:[%s553_s2 + $0x60] sm:$0xff] %v258_v27  ;;  %v399_v28 = vpop.f32.mrb[6].mxu0  ;;  %v407_v29 = vpop.f32.mrb[6].mxu1 }
 0x100   :  { %331 = vst [vmem:[%s553_s2 + $0x38] sm:$0xff] %v399_v28  ;;  %339 = vst [vmem:[%s553_s2 + $0x78] sm:$0xff] %v407_v29  ;;  %v229_v30 = vpop.f32.mrb[7].mxu0  ;;  %v261_v31 = vpop.f32.mrb[7].mxu1 }
 0x101   :  { %329 = vst [vmem:[%s553_s2 + $0x28] sm:$0xff] %v229_v30  ;;  %337 = vst [vmem:[%s553_s2 + $0x68] sm:$0xff] %v261_v31 }

</bundles_post_ra>
